<compile_context>
chip_gen: v6e
topology: v6e:2x2x1
jax: 0.10.0
libtpu: 0.0.40
codegen_flags: <defaults>
</compile_context>

<pallas_src>
import functools

import jax
import jax.numpy as jnp
from jax.experimental import pallas as pl
from jax.experimental.pallas import tpu as pltpu


def _round_up(x: int, m: int) -> int:
    return (x + m - 1) // m * m


def _feature_pad(d: int) -> int:
    # Full-array blocks are exempt from the (8,128) rule, so small feature
    # dims stay unpadded (padding 32->128 would inflate MXU/EUP work 16x/4x);
    # >= 128 is rounded up to a lane multiple for aligned layouts.
    return d if d < 128 else _round_up(d, 128)


def _pick_vmem_limit(needed_bytes: int) -> int:
    """~85% of physical per-core VMEM (128 MiB v5e/v6e, 64 MiB/TC v7x)."""
    try:
        cap = int(getattr(pltpu.get_tpu_info(), "vmem_capacity_bytes",
                          64 * 1024 * 1024))
    except Exception:  # query unavailable -> assume the tightest gen (v7x)
        cap = 64 * 1024 * 1024
    budget = int(cap * 0.85)
    return min(max(int(needed_bytes * 1.25) + (4 << 20), 32 << 20), budget)


def _fnn_kernel(x_ref, w_in_ref, b_in_ref, w_h_ref, b_h_ref,
                w_out_ref, b_out_ref, o_ref, h_ref, *, num_hidden):
    """Grid = (batch tiles, hidden layers); one streamed layer per step."""
    l = pl.program_id(1)
    mxu_dt = w_in_ref.dtype  # bf16 when use_bf16, else f32; f32 accumulation.

    @pl.when(l == 0)
    def _():
        # Input layer + tanh (bias-add / tanh in f32).
        h_ref[...] = jnp.tanh(
            jnp.dot(x_ref[...].astype(mxu_dt), w_in_ref[...],
                    preferred_element_type=jnp.float32) + b_in_ref[...])

    if num_hidden > 0:
        # Hidden layer `l` (weights streamed one layer slab per grid step).
        h_ref[...] = jnp.tanh(
            jnp.dot(h_ref[...].astype(mxu_dt), w_h_ref[...],
                    preferred_element_type=jnp.float32) + b_h_ref[...])

    @pl.when(l == pl.num_programs(1) - 1)
    def _():
        # Output layer (no activation). Padded output columns stay exactly 0.
        o_ref[...] = (jnp.dot(h_ref[...].astype(mxu_dt), w_out_ref[...],
                              preferred_element_type=jnp.float32)
                      + b_out_ref[...]).astype(o_ref.dtype)


def prepare_fnn_params(w_in, b_in, w_h, b_h, w_out, b_out, *, use_bf16=False):
    """Pad (and optionally bf16-cast) parameters ONCE, outside the forward.

    w_in : (input_dim, hidden_dim)        b_in : (1, hidden_dim)
    w_h  : (num_hidden, hidden, hidden)   b_h  : (num_hidden, 1, hidden)
    w_out: (hidden_dim, output_dim)       b_out: (1, output_dim)
    """
    input_dim, hidden_dim = w_in.shape
    output_dim = w_out.shape[1]
    num_hidden = int(w_h.shape[0])

    d_in = _feature_pad(input_dim)
    d_h = _feature_pad(hidden_dim)
    d_out = _round_up(max(output_dim, 1), 128)   # lane-dense unmasked vst
    L = max(num_hidden, 1)                       # grid layer axis must be >= 1

    w_dt = jnp.bfloat16 if use_bf16 else jnp.float32

    params = dict(
        w_in=jnp.pad(w_in, ((0, d_in - input_dim),
                            (0, d_h - hidden_dim))).astype(w_dt),
        b_in=jnp.pad(b_in, ((0, 0), (0, d_h - hidden_dim))).astype(jnp.float32),
        w_h=jnp.pad(w_h, ((0, L - num_hidden),
                          (0, d_h - hidden_dim),
                          (0, d_h - hidden_dim))).astype(w_dt),
        b_h=jnp.pad(b_h, ((0, L - num_hidden),
                          (0, 0),
                          (0, d_h - hidden_dim))).astype(jnp.float32),
        w_out=jnp.pad(w_out, ((0, d_h - hidden_dim),
                              (0, d_out - output_dim))).astype(w_dt),
        b_out=jnp.pad(b_out, ((0, 0), (0, d_out - output_dim))).astype(jnp.float32),
    )
    meta = dict(input_dim=input_dim, hidden_dim=hidden_dim,
                output_dim=output_dim, num_hidden=num_hidden,
                d_in=d_in, d_h=d_h, d_out=d_out, L=L)
    return params, meta


def fnn_forward(x, params, meta, *, tb=512):
    """y = FNN(x).  x: (B, input_dim) -> (B, output_dim)."""
    B, input_dim = x.shape
    assert input_dim == meta["input_dim"]
    d_in, d_h, d_out = meta["d_in"], meta["d_h"], meta["d_out"]
    L, num_hidden = meta["L"], meta["num_hidden"]

    # Batch tile: large tiles amortize ~0.35us/step grid overhead and keep the
    # MXU M dimension at/above the native 256 on v6e/v7x.  Clamped to B.
    tb = max(8, _round_up(min(tb, _round_up(B, 8)), 8))
    b_pad = _round_up(B, tb)

    x_p = jnp.pad(x, ((0, b_pad - B), (0, d_in - input_dim)))

    w_bytes = params["w_in"].dtype.itemsize
    # Double-buffered x/out tiles + one slab of each weight (x2 buffers, w_h is
    # streamed so only one layer slab is live per buffer) + the h carry scratch.
    vmem_needed = (2 * tb * (d_in + d_out) * 4
                   + 2 * (d_in * d_h + d_h * d_h + d_h * d_out) * w_bytes
                   + 2 * (3 * d_h + d_out) * 4
                   + tb * d_h * 4)

    flops = 2 * b_pad * (d_in * d_h + num_hidden * d_h * d_h + d_h * d_out)
    transcendentals = b_pad * d_h * (num_hidden + 1)
    bytes_accessed = int(x_p.size * x_p.dtype.itemsize + b_pad * d_out * 4
                         + sum(p.size * p.dtype.itemsize
                               for p in params.values()))

    kernel = functools.partial(_fnn_kernel, num_hidden=num_hidden)

    out_padded = pl.pallas_call(
        kernel,
        out_shape=jax.ShapeDtypeStruct((b_pad, d_out), x.dtype),
        grid_spec=pltpu.PrefetchScalarGridSpec(
            num_scalar_prefetch=0,
            grid=(b_pad // tb, L),
            in_specs=[
                # Batch-tiled activations; block index constant across the
                # layer axis -> DMA'd once per batch tile.
                pl.BlockSpec((tb, d_in), lambda i, l: (i, 0)),
                # Input-layer weights/bias: resident (constant index map).
                pl.BlockSpec((d_in, d_h), lambda i, l: (0, 0)),
                pl.BlockSpec((1, d_h), lambda i, l: (0, 0)),
                # Hidden weights/biases: streamed one layer per grid step.
                pl.BlockSpec((None, d_h, d_h), lambda i, l: (l, 0, 0)),
                pl.BlockSpec((None, 1, d_h), lambda i, l: (l, 0, 0)),
                # Output-layer weights/bias: resident.
                pl.BlockSpec((d_h, d_out), lambda i, l: (0, 0)),
                pl.BlockSpec((1, d_out), lambda i, l: (0, 0)),
            ],
            out_specs=pl.BlockSpec((tb, d_out), lambda i, l: (i, 0)),
            scratch_shapes=[pltpu.VMEM((tb, d_h), jnp.float32)],
        ),
        compiler_params=pltpu.CompilerParams(
            dimension_semantics=("parallel", "arbitrary"),
            vmem_limit_bytes=_pick_vmem_limit(vmem_needed)),
        cost_estimate=pl.CostEstimate(
            flops=flops,
            transcendentals=transcendentals,
            bytes_accessed=bytes_accessed),
    )(x_p, params["w_in"], params["b_in"], params["w_h"], params["b_h"],
      params["w_out"], params["b_out"])

    return out_padded[:B, :meta["output_dim"]]


def _init_linear(key, fan_in, fan_out, dtype=jnp.float32):
    # PyTorch nn.Linear default: U(-1/sqrt(fan_in), 1/sqrt(fan_in))
    kw, kb = jax.random.split(key)
    bound = 1.0 / jnp.sqrt(jnp.asarray(fan_in, dtype))
    w = jax.random.uniform(kw, (fan_in, fan_out), dtype, -bound, bound)
    b = jax.random.uniform(kb, (1, fan_out), dtype, -bound, bound)
    return w, b


def _reference(x, w_in, b_in, w_h, b_h, w_out, b_out, num_hidden):
    h = jnp.tanh(x @ w_in + b_in)
    for l in range(num_hidden):
        h = jnp.tanh(h @ w_h[l] + b_h[l])
    return h @ w_out + b_out


if __name__ == "__main__":
    input_dim, output_dim, num_hidden, hidden_dim = 4, 2, 2, 32
    batch = 256

    key = jax.random.PRNGKey(0)
    k_x, k_in, k_out, *k_hid = jax.random.split(key, 3 + num_hidden)

    x = jax.random.normal(k_x, (batch, input_dim), jnp.float32)
    w_in, b_in = _init_linear(k_in, input_dim, hidden_dim)
    hid = [_init_linear(k, hidden_dim, hidden_dim) for k in k_hid]
    w_h = jnp.stack([w for w, _ in hid])                        # (L, H, H)
    b_h = jnp.stack([b for _, b in hid])                        # (L, 1, H)
    w_out, b_out = _init_linear(k_out, hidden_dim, output_dim)

    y_ref = _reference(x, w_in, b_in, w_h, b_h, w_out, b_out, num_hidden)

    # f32 MXU path: matches the f32 reference at tight tolerance.
    params32, meta = prepare_fnn_params(w_in, b_in, w_h, b_h, w_out, b_out,
                                        use_bf16=False)
    y32 = jax.block_until_ready(fnn_forward(x, params32, meta))
    assert y32.shape == (batch, output_dim)
    assert jnp.allclose(y32, y_ref, atol=1e-5, rtol=1e-5), \
        float(jnp.max(jnp.abs(y32 - y_ref)))

    # bf16 MXU path (f32 accumulation): ~2-4x MXU throughput, looser tolerance.
    params16, meta16 = prepare_fnn_params(w_in, b_in, w_h, b_h, w_out, b_out,
                                          use_bf16=True)
    y16 = jax.block_until_ready(fnn_forward(x, params16, meta16))
    assert y16.shape == (batch, output_dim)
    assert jnp.allclose(y16, y_ref, atol=5e-2, rtol=5e-2), \
        float(jnp.max(jnp.abs(y16 - y_ref)))

    print("KERNEL_OK")
</pallas_src>

<mosaic_0001>
module attributes {stable_mosaic.version = 11 : i64} {
  func.func @_fnn_kernel(%arg0: i32, %arg1: i32, %arg2: memref<256x4xf32, #tpu.memory_space<vmem>>, %arg3: memref<4x32xf32, #tpu.memory_space<vmem>>, %arg4: memref<1x32xf32, #tpu.memory_space<vmem>>, %arg5: memref<1x32x32xf32, #tpu.memory_space<vmem>>, %arg6: memref<1x1x32xf32, #tpu.memory_space<vmem>>, %arg7: memref<32x128xf32, #tpu.memory_space<vmem>>, %arg8: memref<1x128xf32, #tpu.memory_space<vmem>>, %arg9: memref<256x128xf32, #tpu.memory_space<vmem>>, %arg10: memref<256x32xf32, #tpu.memory_space<vmem>>) attributes {dimension_semantics = [#tpu.dimension_semantics<parallel>, #tpu.dimension_semantics<arbitrary>], iteration_bounds = array<i64: 1, 2>, scalar_prefetch = 0 : i64, scratch_operands = 1 : i64, tpu.core_type = #tpu.core_type<tc>, window_params = [{transform_indices = @transform_0, window_bounds = array<i64: 256, 4>}, {pipeline_mode = #tpu.pipeline_mode<synchronous>, transform_indices = @transform_1, window_bounds = array<i64: 4, 32>}, {pipeline_mode = #tpu.pipeline_mode<synchronous>, transform_indices = @transform_2, window_bounds = array<i64: 1, 32>}, {transform_indices = @transform_3, window_bounds = array<i64: 1, 32, 32>}, {transform_indices = @transform_4, window_bounds = array<i64: 1, 1, 32>}, {pipeline_mode = #tpu.pipeline_mode<synchronous>, transform_indices = @transform_5, window_bounds = array<i64: 32, 128>}, {pipeline_mode = #tpu.pipeline_mode<synchronous>, transform_indices = @transform_6, window_bounds = array<i64: 1, 128>}, {transform_indices = @transform_7, window_bounds = array<i64: 256, 128>}]} {
    %c0_i32 = arith.constant 0 : i32
    %0 = arith.cmpi eq, %arg1, %c0_i32 : i32
    %1 = arith.extui %0 : i1 to i32
    %c0_i32_0 = arith.constant 0 : i32
    %2 = arith.cmpi ne, %1, %c0_i32_0 : i32
    scf.if %2 {
      %c0_11 = arith.constant 0 : index
      %c0_12 = arith.constant 0 : index
      %16 = vector.load %arg2[%c0_11, %c0_12] : memref<256x4xf32, #tpu.memory_space<vmem>>, vector<256x4xf32>
      %c0_13 = arith.constant 0 : index
      %c0_14 = arith.constant 0 : index
      %17 = vector.load %arg3[%c0_13, %c0_14] : memref<4x32xf32, #tpu.memory_space<vmem>>, vector<4x32xf32>
      %cst_15 = arith.constant dense<0.000000e+00> : vector<256x32xf32>
      %18 = tpu.matmul %16, %17, %cst_15 {dimension_numbers = #tpu.dot_dimension_numbers<[1], [0], [0], [1], [0, 0, 1, 1], [], []>} : vector<256x4xf32>, vector<4x32xf32>, vector<256x32xf32> -> vector<256x32xf32>
      %c0_16 = arith.constant 0 : index
      %c0_17 = arith.constant 0 : index
      %19 = vector.load %arg4[%c0_16, %c0_17] : memref<1x32xf32, #tpu.memory_space<vmem>>, vector<1x32xf32>
      %20 = vector.broadcast %19 : vector<1x32xf32> to vector<256x32xf32>
      %21 = arith.addf %18, %20 : vector<256x32xf32>
      %22 = math.tanh %21 : vector<256x32xf32>
      %c0_18 = arith.constant 0 : index
      %c0_19 = arith.constant 0 : index
      %23 = vector.load %arg10[%c0_18, %c0_19] : memref<256x32xf32, #tpu.memory_space<vmem>>, vector<256x32xf32>
      tpu.vector_store %arg10[%c0_18, %c0_19], %22 {strides = array<i32>} : memref<256x32xf32, #tpu.memory_space<vmem>>, vector<256x32xf32>,
    } else {
    }
    %c0 = arith.constant 0 : index
    %c0_1 = arith.constant 0 : index
    %3 = vector.load %arg10[%c0, %c0_1] : memref<256x32xf32, #tpu.memory_space<vmem>>, vector<256x32xf32>
    %c0_2 = arith.constant 0 : index
    %c0_3 = arith.constant 0 : index
    %c0_4 = arith.constant 0 : index
    %4 = vector.load %arg5[%c0_2, %c0_3, %c0_4] : memref<1x32x32xf32, #tpu.memory_space<vmem>>, vector<1x32x32xf32>
    %5 = vector.shape_cast %4 : vector<1x32x32xf32> to vector<32x32xf32>
    %cst = arith.constant dense<0.000000e+00> : vector<256x32xf32>
    %6 = tpu.matmul %3, %5, %cst {dimension_numbers = #tpu.dot_dimension_numbers<[1], [0], [0], [1], [0, 0, 1, 1], [], []>} : vector<256x32xf32>, vector<32x32xf32>, vector<256x32xf32> -> vector<256x32xf32>
    %c0_5 = arith.constant 0 : index
    %c0_6 = arith.constant 0 : index
    %c0_7 = arith.constant 0 : index
    %7 = vector.load %arg6[%c0_5, %c0_6, %c0_7] : memref<1x1x32xf32, #tpu.memory_space<vmem>>, vector<1x1x32xf32>
    %8 = vector.shape_cast %7 : vector<1x1x32xf32> to vector<1x32xf32>
    %9 = vector.broadcast %8 : vector<1x32xf32> to vector<256x32xf32>
    %10 = arith.addf %6, %9 : vector<256x32xf32>
    %11 = math.tanh %10 : vector<256x32xf32>
    %c0_8 = arith.constant 0 : index
    %c0_9 = arith.constant 0 : index
    %12 = vector.load %arg10[%c0_8, %c0_9] : memref<256x32xf32, #tpu.memory_space<vmem>>, vector<256x32xf32>
    tpu.vector_store %arg10[%c0_8, %c0_9], %11 {strides = array<i32>} : memref<256x32xf32, #tpu.memory_space<vmem>>, vector<256x32xf32>,
    %c1_i32 = arith.constant 1 : i32
    %13 = arith.cmpi eq, %arg1, %c1_i32 : i32
    %14 = arith.extui %13 : i1 to i32
    %c0_i32_10 = arith.constant 0 : i32
    %15 = arith.cmpi ne, %14, %c0_i32_10 : i32
    scf.if %15 {
      %c0_11 = arith.constant 0 : index
      %c0_12 = arith.constant 0 : index
      %16 = vector.load %arg10[%c0_11, %c0_12] : memref<256x32xf32, #tpu.memory_space<vmem>>, vector<256x32xf32>
      %c0_13 = arith.constant 0 : index
      %c0_14 = arith.constant 0 : index
      %17 = vector.load %arg7[%c0_13, %c0_14] : memref<32x128xf32, #tpu.memory_space<vmem>>, vector<32x128xf32>
      %cst_15 = arith.constant dense<0.000000e+00> : vector<256x128xf32>
      %18 = tpu.matmul %16, %17, %cst_15 {dimension_numbers = #tpu.dot_dimension_numbers<[1], [0], [0], [1], [0, 0, 1, 1], [], []>} : vector<256x32xf32>, vector<32x128xf32>, vector<256x128xf32> -> vector<256x128xf32>
      %c0_16 = arith.constant 0 : index
      %c0_17 = arith.constant 0 : index
      %19 = vector.load %arg8[%c0_16, %c0_17] : memref<1x128xf32, #tpu.memory_space<vmem>>, vector<1x128xf32>
      %20 = vector.broadcast %19 : vector<1x128xf32> to vector<256x128xf32>
      %21 = arith.addf %18, %20 : vector<256x128xf32>
      %c0_18 = arith.constant 0 : index
      %c0_19 = arith.constant 0 : index
      %22 = vector.load %arg9[%c0_18, %c0_19] : memref<256x128xf32, #tpu.memory_space<vmem>>, vector<256x128xf32>
      tpu.vector_store %arg9[%c0_18, %c0_19], %21 {strides = array<i32>} : memref<256x128xf32, #tpu.memory_space<vmem>>, vector<256x128xf32>,
    } else {
    }
    return
  }
  func.func @transform_0(%arg0: i32, %arg1: i32) -> (i32, i32) {
    %c0_i32 = arith.constant 0 : i32
    %c0_i32_0 = arith.constant 0 : i32
    return %arg0, %c0_i32 : i32, i32
  }
  func.func @transform_1(%arg0: i32, %arg1: i32) -> (i32, i32) {
    %c0_i32 = arith.constant 0 : i32
    %c0_i32_0 = arith.constant 0 : i32
    %c0_i32_1 = arith.constant 0 : i32
    return %c0_i32, %c0_i32_0 : i32, i32
  }
  func.func @transform_2(%arg0: i32, %arg1: i32) -> (i32, i32) {
    %c0_i32 = arith.constant 0 : i32
    %c0_i32_0 = arith.constant 0 : i32
    %c0_i32_1 = arith.constant 0 : i32
    return %c0_i32, %c0_i32_0 : i32, i32
  }
  func.func @transform_3(%arg0: i32, %arg1: i32) -> (i32, i32, i32) {
    %c0_i32 = arith.constant 0 : i32
    %c0_i32_0 = arith.constant 0 : i32
    %c0_i32_1 = arith.constant 0 : i32
    return %arg1, %c0_i32, %c0_i32_0 : i32, i32, i32
  }
  func.func @transform_4(%arg0: i32, %arg1: i32) -> (i32, i32, i32) {
    %c0_i32 = arith.constant 0 : i32
    %c0_i32_0 = arith.constant 0 : i32
    %c0_i32_1 = arith.constant 0 : i32
    return %arg1, %c0_i32, %c0_i32_0 : i32, i32, i32
  }
  func.func @transform_5(%arg0: i32, %arg1: i32) -> (i32, i32) {
    %c0_i32 = arith.constant 0 : i32
    %c0_i32_0 = arith.constant 0 : i32
    %c0_i32_1 = arith.constant 0 : i32
    return %c0_i32, %c0_i32_0 : i32, i32
  }
  func.func @transform_6(%arg0: i32, %arg1: i32) -> (i32, i32) {
    %c0_i32 = arith.constant 0 : i32
    %c0_i32_0 = arith.constant 0 : i32
    %c0_i32_1 = arith.constant 0 : i32
    return %c0_i32, %c0_i32_0 : i32, i32
  }
  func.func @transform_7(%arg0: i32, %arg1: i32) -> (i32, i32) {
    %c0_i32 = arith.constant 0 : i32
    %c0_i32_0 = arith.constant 0 : i32
    return %arg0, %c0_i32 : i32, i32
  }
}

</mosaic_0001>

<bundles_post_ra>
// kernel: tpu_custom_call.1
= control target key start
LH: loop header
LB: loop body
LE: loop exit
PB: predicated region body
PF: predicated region fallthrough
CT: control target
= control target key end

     0   :  { %12 = vsyncpa [#allocation4], 0  ;;  %s2324_s24 = smov 0   ;;  %s2326_s25 = smov 0   ;;  %s2775_s0 = inlined_call_operand.vmem [shape: f32[256,4], index: 0, kind: input, shape index: {}]   ;;  %s2776_s1 = inlined_call_operand.vmem [shape: f32[4,32], index: 1, kind: input, shape index: {}]   ;;  %s2777_s2 = inlined_call_operand.vmem [shape: f32[1,32], index: 2, kind: input, shape index: {}]   ;;  %s2778_s3 = inlined_call_operand.vmem [shape: f32[2,32,32], index: 3, kind: input, shape index: {}]   ;;  %s2779_s4 = inlined_call_operand.vmem [shape: f32[2,1,32], index: 4, kind: input, shape index: {}]   ;;  %s2780_s5 = inlined_call_operand.vmem [shape: f32[32,128], index: 5, kind: input, shape index: {}]   ;;  %s2781_s6 = inlined_call_operand.vmem [shape: f32[1,128], index: 6, kind: input, shape index: {}]   ;;  %s2782_s7 = inlined_call_operand.hbm [shape: f32[256,128], index: 7, kind: output, shape index: {}]  }
   0x1   :  { %s2328_s26 = smov 0  }
   0x2 LB: > { %s1669_s27 = sadd.s32 4294967295, %s2279_s26   ;;  %s27_s28 = sadd.s32 1, %s2275_s25  ;;  %s2279_s26 = sphi %s2328_s26, %s18_s26   ;;  %s2275_s25 = sphi %s2326_s25, %s2785_s25   ;;  %s2271_s24 = sphi %s2324_s24, %s2784_s24  }
   0x3   : > { %p28_p0 = scmp.ge.s32.totalorder %s27_s28, 2  ;;  %p1673_p1 = scmp.ge.s32.totalorder %s2279_s26, 1 }
   0x4   : > { %p269_p2 = scmp.lt.s32.totalorder %s2279_s26, 3 }
   0x5   : > { %s2787_s28 = smov (%p28_p0, %s27_s28), 0 }
   0x6   : > { %p270_p3 = pnand %p1673_p1, %p269_p2 }
   0x7   : > { %p310_p4 = scmp.lt.s32.totalorder (!%p270_p3), %s2271_s24, 1  ;;  %p1676_p5 = scmp.ne.s32.totalorder (!%p270_p3), %s2271_s24, 0 }
   0x8   : > { %273 = sbr.rel (%p270_p3) target bundleno = 767 (0x2ff), region = 48 }
   0xd   : > { %s2347_s29 = scalar_select %p310_p4, %s2271_s24, 1 }
   0xe   : > { %322 = sbr.rel (%p1676_p5) target bundleno = 264 (0x108), region = 52 }
   0xf   : > { %s1782_s30 = sshll.u32 %s2347_s29, 5  ;;  %s317_s10 = scalar_lea.vmem %s2779_s4, %s2347_s29 }
  0x10   : > { %s2357_s13 = scalar_lea.vmem %s2778_s3, %s1782_s30 }
  0x13   : > { %v355_v0 = vld [vmem:[%s2776_s1] sm:$0xf]  ;;  %vm460_vm0 = vcmask 1043456   ;;  %vm363_vm1 = vcmask 31744   ;;  %v324_v3 = vld [vmem:[%s2775_s0 + $0x8] sm:$0xff]  ;;  %v325_v5 = vld [vmem:[%s2775_s0 + $0x10] sm:$0xff] }
  0x14   : > { %v323_v1 = vld [vmem:[%s2775_s0] sm:$0xff]  ;;  %1888 = vmatprep.subr.msk.mxu0 %vm460_vm0, %v355_v0  ;;  %2050 = vmatprep.subr.msk.mxu1 %vm460_vm0, %v355_v0  ;;  %v340_v4 = vld [vmem:[%s2775_s0 + $0x88] sm:$0xff]  ;;  %v341_v6 = vld [vmem:[%s2775_s0 + $0x90] sm:$0xff]  ;;  %vm721_vm2 = vcmask 261120  }
  0x15   : > { %v339_v2 = vld [vmem:[%s2775_s0 + $0x80] sm:$0xff]  ;;  %1889 = vmatpush3.msk.msra.mxu0 %vm460_vm0, %v355_v0  ;;  %2051 = vmatpush3.msk.msra.mxu1 %vm460_vm0, %v355_v0  ;;  %v326_v7 = vld [vmem:[%s2775_s0 + $0x18] sm:$0xff]  ;;  %v328_v11 = vld [vmem:[%s2775_s0 + $0x28] sm:$0xff] }
  0x16   : > { %1890 = vmatprep.mubr.msk.f32.mxu0 %vm363_vm1, %v323_v1  ;;  %1914 = vmatprep.mubr.msk.f32.mxu1 %vm363_vm1, %v339_v2  ;;  %v342_v8 = vld [vmem:[%s2775_s0 + $0x98] sm:$0xff]  ;;  %v327_v9 = vld [vmem:[%s2775_s0 + $0x20] sm:$0xff]  ;;  %v344_v12 = vld [vmem:[%s2775_s0 + $0xa8] sm:$0xff] }
  0x17   : > { %1891 = vmatmul.mubr.msk.f32.vlgmr.msra.gmra.mxu0 %vm363_vm1, %v324_v3  ;;  %1915 = vmatmul.mubr.msk.f32.vlgmr.msra.gmra.mxu1 %vm363_vm1, %v340_v4  ;;  %v343_v10 = vld [vmem:[%s2775_s0 + $0xa0] sm:$0xff]  ;;  %v329_v13 = vld [vmem:[%s2775_s0 + $0x30] sm:$0xff]  ;;  %v330_v15 = vld [vmem:[%s2775_s0 + $0x38] sm:$0xff] }
  0x18   : > { %1893 = vmatprep.mubr.msk.f32.mxu0 %vm363_vm1, %v325_v5  ;;  %1917 = vmatprep.mubr.msk.f32.mxu1 %vm363_vm1, %v341_v6  ;;  %v345_v14 = vld [vmem:[%s2775_s0 + $0xb0] sm:$0xff]  ;;  %v346_v16 = vld [vmem:[%s2775_s0 + $0xb8] sm:$0xff]  ;;  %v331_v17 = vld [vmem:[%s2775_s0 + $0x40] sm:$0xff] }
  0x19   : > { %v347_v18 = vld [vmem:[%s2775_s0 + $0xc0] sm:$0xff]  ;;  %v332_v19 = vld [vmem:[%s2775_s0 + $0x48] sm:$0xff]  ;;  %v333_v21 = vld [vmem:[%s2775_s0 + $0x50] sm:$0xff] }
  0x1a   : > { %v348_v20 = vld [vmem:[%s2775_s0 + $0xc8] sm:$0xff]  ;;  %v349_v22 = vld [vmem:[%s2775_s0 + $0xd0] sm:$0xff]  ;;  %v334_v23 = vld [vmem:[%s2775_s0 + $0x58] sm:$0xff] }
  0x1b   : > { %1894 = vmatmul.mubr.msk.f32.gmra.mxu0 %vm363_vm1, %v326_v7  ;;  %1918 = vmatmul.mubr.msk.f32.gmra.mxu1 %vm363_vm1, %v342_v8  ;;  %v350_v24 = vld [vmem:[%s2775_s0 + $0xd8] sm:$0xff]  ;;  %v335_v25 = vld [vmem:[%s2775_s0 + $0x60] sm:$0xff]  ;;  %v336_v27 = vld [vmem:[%s2775_s0 + $0x68] sm:$0xff] }
  0x1c   : > { %1896 = vmatprep.mubr.msk.f32.mxu0 %vm363_vm1, %v327_v9  ;;  %1920 = vmatprep.mubr.msk.f32.mxu1 %vm363_vm1, %v343_v10  ;;  %v351_v26 = vld [vmem:[%s2775_s0 + $0xe0] sm:$0xff]  ;;  %v352_v28 = vld [vmem:[%s2775_s0 + $0xe8] sm:$0xff]  ;;  %v337_v29 = vld [vmem:[%s2775_s0 + $0x70] sm:$0xff] }
  0x1d   : > { %v353_v30 = vld [vmem:[%s2775_s0 + $0xf0] sm:$0xff]  ;;  %v338_v31 = vld [vmem:[%s2775_s0 + $0x78] sm:$0xff]  ;;  %v2494_v33 = vld [vmem:[%s2777_s2] ss:$0 sm:$0xff] }
  0x1e   : > { %v354_v32 = vld [vmem:[%s2775_s0 + $0xf8] sm:$0xff] }
  0x1f   : > { %1897 = vmatmul.mubr.msk.f32.gmra.mxu0 %vm363_vm1, %v328_v11  ;;  %1921 = vmatmul.mubr.msk.f32.gmra.mxu1 %vm363_vm1, %v344_v12 }
  0x20   : > { %1899 = vmatprep.mubr.msk.f32.mxu0 %vm363_vm1, %v329_v13  ;;  %1923 = vmatprep.mubr.msk.f32.mxu1 %vm363_vm1, %v345_v14 }
  0x23   : > { %1900 = vmatmul.mubr.msk.f32.gmra.mxu0 %vm363_vm1, %v330_v15  ;;  %1924 = vmatmul.mubr.msk.f32.gmra.mxu1 %vm363_vm1, %v346_v16 }
  0x24   : > { %1902 = vmatprep.mubr.msk.f32.mxu0 %vm363_vm1, %v331_v17  ;;  %1926 = vmatprep.mubr.msk.f32.mxu1 %vm363_vm1, %v347_v18 }
  0x27   : > { %1903 = vmatmul.mubr.msk.f32.gmra.mxu0 %vm363_vm1, %v332_v19  ;;  %1927 = vmatmul.mubr.msk.f32.gmra.mxu1 %vm363_vm1, %v348_v20 }
  0x28   : > { %1905 = vmatprep.mubr.msk.f32.mxu0 %vm363_vm1, %v333_v21  ;;  %1929 = vmatprep.mubr.msk.f32.mxu1 %vm363_vm1, %v349_v22 }
  0x2b   : > { %1906 = vmatmul.mubr.msk.f32.gmra.mxu0 %vm363_vm1, %v334_v23  ;;  %1930 = vmatmul.mubr.msk.f32.gmra.mxu1 %vm363_vm1, %v350_v24 }
  0x2c   : > { %1908 = vmatprep.mubr.msk.f32.mxu0 %vm363_vm1, %v335_v25  ;;  %1932 = vmatprep.mubr.msk.f32.mxu1 %vm363_vm1, %v351_v26 }
  0x2f   : > { %1909 = vmatmul.mubr.msk.f32.gmra.mxu0 %vm363_vm1, %v336_v27  ;;  %1933 = vmatmul.mubr.msk.f32.gmra.mxu1 %vm363_vm1, %v352_v28 }
  0x30   : > { %1911 = vmatprep.mubr.msk.f32.mxu0 %vm363_vm1, %v337_v29  ;;  %1935 = vmatprep.mubr.msk.f32.mxu1 %vm363_vm1, %v353_v30 }
  0x33   : > { %1912 = vmatmul.mubr.msk.f32.gmra.mxu0 %vm363_vm1, %v338_v31  ;;  %1936 = vmatmul.mubr.msk.f32.gmra.mxu1 %vm363_vm1, %v354_v32 }
  0xd7   : > { %v1892_v34 = vpop.f32.mrf.mxu0  ;;  %v1916_v35 = vpop.f32.mrf.mxu1 }
  0xd8   : > { %v536_v36 = vadd.f32 %v1892_v34, %v2494_v33  ;;  %v616_v37 = vadd.f32 %v1916_v35, %v2494_v33 }
  0xd9   : > { %v530_v38 = vpop.f32.mrf.mxu0  ;;  %v610_v39 = vpop.f32.mrf.mxu1 }
  0xda   : > { %2101 = vtanh.f32 %v536_v36  ;;  %v531_v40 = vadd.f32 %v2494_v33, %v530_v38  ;;  %v611_v41 = vadd.f32 %v2494_v33, %v610_v39 }
  0xdb   : > { %2103 = vtanh.f32 %v616_v37  ;;  %v1895_v42 = vpop.f32.mrf.mxu0  ;;  %v1919_v43 = vpop.f32.mrf.mxu1 }
  0xdc   : > { %2105 = vtanh.f32 %v531_v40  ;;  %v546_v44 = vadd.f32 %v1895_v42, %v2494_v33  ;;  %v626_v45 = vadd.f32 %v1919_v43, %v2494_v33 }
  0xdd   : > { %2107 = vtanh.f32 %v611_v41  ;;  %v540_v46 = vpop.f32.mrf.mxu0  ;;  %v620_v47 = vpop.f32.mrf.mxu1 }
  0xde   : > { %2109 = vtanh.f32 %v546_v44  ;;  %v541_v48 = vadd.f32 %v2494_v33, %v540_v46  ;;  %v621_v49 = vadd.f32 %v2494_v33, %v620_v47 }
  0xdf   : > { %2111 = vtanh.f32 %v626_v45  ;;  %v1898_v50 = vpop.f32.mrf.mxu0  ;;  %v1922_v51 = vpop.f32.mrf.mxu1 }
  0xe0   : > { %2113 = vtanh.f32 %v541_v48  ;;  %v556_v52 = vadd.f32 %v1898_v50, %v2494_v33  ;;  %v636_v53 = vadd.f32 %v1922_v51, %v2494_v33 }
  0xe1   : > { %2115 = vtanh.f32 %v621_v49  ;;  %v550_v54 = vpop.f32.mrf.mxu0  ;;  %v630_v55 = vpop.f32.mrf.mxu1 }
  0xe2   : > { %2117 = vtanh.f32 %v556_v52  ;;  %v551_v56 = vadd.f32 %v2494_v33, %v550_v54  ;;  %v631_v57 = vadd.f32 %v2494_v33, %v630_v55 }
  0xe3   : > { %2119 = vtanh.f32 %v636_v53  ;;  %v1901_v58 = vpop.f32.mrf.mxu0  ;;  %v1925_v59 = vpop.f32.mrf.mxu1 }
  0xe4   : > { %2121 = vtanh.f32 %v551_v56  ;;  %v566_v60 = vadd.f32 %v1901_v58, %v2494_v33  ;;  %v646_v61 = vadd.f32 %v1925_v59, %v2494_v33 }
  0xe5   : > { %2123 = vtanh.f32 %v631_v57  ;;  %v560_v62 = vpop.f32.mrf.mxu0  ;;  %v640_v63 = vpop.f32.mrf.mxu1 }
  0xe6   : > { %2125 = vtanh.f32 %v566_v60  ;;  %v561_v0 = vadd.f32 %v2494_v33, %v560_v62  ;;  %v641_v1 = vadd.f32 %v2494_v33, %v640_v63 }
  0xe7   : > { %v2102_v2 = vpop.eup %2101  ;;  %2127 = vtanh.f32 %v646_v61  ;;  %v1904_v3 = vpop.f32.mrf.mxu0 }
  0xe8   : > { %v1928_v4 = vpop.f32.mrf.mxu1  ;;  %v2104_v5 = vpop.eup %2103  ;;  %723 = vst.msk [vmem:[#allocation2 + $0x8] sm:$0xff] %vm721_vm2, %v2102_v2  ;;  %2129 = vtanh.f32 %v561_v0  ;;  %v576_v6 = vadd.f32 %v1904_v3, %v2494_v33 }
  0xe9   : > { %v656_v7 = vadd.f32 %v1928_v4, %v2494_v33  ;;  %v2106_v8 = vpop.eup %2105  ;;  %739 = vst.msk [vmem:[#allocation2 + $0x88] sm:$0xff] %vm721_vm2, %v2104_v5  ;;  %2131 = vtanh.f32 %v641_v1  ;;  %v570_v9 = vpop.f32.mrf.mxu0 }
  0xea   : > { %v650_v10 = vpop.f32.mrf.mxu1  ;;  %v2108_v11 = vpop.eup %2107  ;;  %722 = vst.msk [vmem:[#allocation2] sm:$0xff] %vm721_vm2, %v2106_v8  ;;  %2133 = vtanh.f32 %v576_v6  ;;  %v571_v12 = vadd.f32 %v2494_v33, %v570_v9 }
  0xeb   : > { %v651_v13 = vadd.f32 %v2494_v33, %v650_v10  ;;  %v2110_v14 = vpop.eup %2109  ;;  %738 = vst.msk [vmem:[#allocation2 + $0x80] sm:$0xff] %vm721_vm2, %v2108_v11  ;;  %2135 = vtanh.f32 %v656_v7  ;;  %v1907_v15 = vpop.f32.mrf.mxu0 }
  0xec   : > { %v1931_v16 = vpop.f32.mrf.mxu1  ;;  %v2112_v17 = vpop.eup %2111  ;;  %725 = vst.msk [vmem:[#allocation2 + $0x18] sm:$0xff] %vm721_vm2, %v2110_v14  ;;  %2137 = vtanh.f32 %v571_v12  ;;  %v586_v18 = vadd.f32 %v1907_v15, %v2494_v33 }
  0xed   : > { %v666_v19 = vadd.f32 %v1931_v16, %v2494_v33  ;;  %v2114_v20 = vpop.eup %2113  ;;  %741 = vst.msk [vmem:[#allocation2 + $0x98] sm:$0xff] %vm721_vm2, %v2112_v17  ;;  %2139 = vtanh.f32 %v651_v13  ;;  %v580_v21 = vpop.f32.mrf.mxu0 }
  0xee   : > { %v660_v22 = vpop.f32.mrf.mxu1  ;;  %v2116_v23 = vpop.eup %2115  ;;  %724 = vst.msk [vmem:[#allocation2 + $0x10] sm:$0xff] %vm721_vm2, %v2114_v20  ;;  %2141 = vtanh.f32 %v586_v18  ;;  %v581_v24 = vadd.f32 %v2494_v33, %v580_v21 }
  0xef   : > { %v661_v25 = vadd.f32 %v2494_v33, %v660_v22  ;;  %v2118_v26 = vpop.eup %2117  ;;  %740 = vst.msk [vmem:[#allocation2 + $0x90] sm:$0xff] %vm721_vm2, %v2116_v23  ;;  %2143 = vtanh.f32 %v666_v19  ;;  %v1910_v27 = vpop.f32.mrf.mxu0 }
  0xf0   : > { %v1934_v28 = vpop.f32.mrf.mxu1  ;;  %v2120_v29 = vpop.eup %2119  ;;  %727 = vst.msk [vmem:[#allocation2 + $0x28] sm:$0xff] %vm721_vm2, %v2118_v26  ;;  %2145 = vtanh.f32 %v581_v24  ;;  %v596_v30 = vadd.f32 %v1910_v27, %v2494_v33 }
  0xf1   : > { %v676_v31 = vadd.f32 %v1934_v28, %v2494_v33  ;;  %v2122_v32 = vpop.eup %2121  ;;  %743 = vst.msk [vmem:[#allocation2 + $0xa8] sm:$0xff] %vm721_vm2, %v2120_v29  ;;  %2147 = vtanh.f32 %v661_v25  ;;  %v590_v34 = vpop.f32.mrf.mxu0 }
  0xf2   : > { %v670_v35 = vpop.f32.mrf.mxu1  ;;  %v2124_v36 = vpop.eup %2123  ;;  %726 = vst.msk [vmem:[#allocation2 + $0x20] sm:$0xff] %vm721_vm2, %v2122_v32  ;;  %2149 = vtanh.f32 %v596_v30  ;;  %v591_v37 = vadd.f32 %v2494_v33, %v590_v34 }
  0xf3   : > { %v671_v38 = vadd.f32 %v2494_v33, %v670_v35  ;;  %v2126_v39 = vpop.eup %2125  ;;  %742 = vst.msk [vmem:[#allocation2 + $0xa0] sm:$0xff] %vm721_vm2, %v2124_v36  ;;  %2151 = vtanh.f32 %v676_v31  ;;  %v1913_v40 = vpop.f32.mrf.mxu0 }
  0xf4   : > { %v1937_v41 = vpop.f32.mrf.mxu1  ;;  %v2128_v42 = vpop.eup %2127  ;;  %729 = vst.msk [vmem:[#allocation2 + $0x38] sm:$0xff] %vm721_vm2, %v2126_v39  ;;  %2153 = vtanh.f32 %v591_v37  ;;  %v606_v43 = vadd.f32 %v1913_v40, %v2494_v33 }
  0xf5   : > { %v686_v44 = vadd.f32 %v1937_v41, %v2494_v33  ;;  %v2130_v45 = vpop.eup %2129  ;;  %745 = vst.msk [vmem:[#allocation2 + $0xb8] sm:$0xff] %vm721_vm2, %v2128_v42  ;;  %2155 = vtanh.f32 %v671_v38  ;;  %v600_v46 = vpop.f32.mrf.mxu0 }
  0xf6   : > { %v680_v47 = vpop.f32.mrf.mxu1  ;;  %v2132_v48 = vpop.eup %2131  ;;  %728 = vst.msk [vmem:[#allocation2 + $0x30] sm:$0xff] %vm721_vm2, %v2130_v45  ;;  %2157 = vtanh.f32 %v606_v43  ;;  %v601_v49 = vadd.f32 %v2494_v33, %v600_v46 }
  0xf7   : > { %v681_v50 = vadd.f32 %v2494_v33, %v680_v47  ;;  %v2134_v51 = vpop.eup %2133  ;;  %744 = vst.msk [vmem:[#allocation2 + $0xb0] sm:$0xff] %vm721_vm2, %v2132_v48  ;;  %2159 = vtanh.f32 %v686_v44 }
  0xf8   : > { %v2136_v52 = vpop.eup %2135  ;;  %731 = vst.msk [vmem:[#allocation2 + $0x48] sm:$0xff] %vm721_vm2, %v2134_v51  ;;  %2161 = vtanh.f32 %v601_v49 }
  0xf9   : > { %v2138_v53 = vpop.eup %2137  ;;  %747 = vst.msk [vmem:[#allocation2 + $0xc8] sm:$0xff] %vm721_vm2, %v2136_v52  ;;  %2163 = vtanh.f32 %v681_v50 }
  0xfa   : > { %v2140_v54 = vpop.eup %2139  ;;  %730 = vst.msk [vmem:[#allocation2 + $0x40] sm:$0xff] %vm721_vm2, %v2138_v53 }
  0xfb   : > { %v2142_v55 = vpop.eup %2141  ;;  %746 = vst.msk [vmem:[#allocation2 + $0xc0] sm:$0xff] %vm721_vm2, %v2140_v54 }
  0xfc   : > { %v2144_v56 = vpop.eup %2143  ;;  %733 = vst.msk [vmem:[#allocation2 + $0x58] sm:$0xff] %vm721_vm2, %v2142_v55 }
  0xfd   : > { %v2146_v33 = vpop.eup %2145  ;;  %749 = vst.msk [vmem:[#allocation2 + $0xd8] sm:$0xff] %vm721_vm2, %v2144_v56 }
  0xfe   : > { %v2148_v57 = vpop.eup %2147  ;;  %732 = vst.msk [vmem:[#allocation2 + $0x50] sm:$0xff] %vm721_vm2, %v2146_v33 }
  0xff   : > { %v2150_v58 = vpop.eup %2149  ;;  %748 = vst.msk [vmem:[#allocation2 + $0xd0] sm:$0xff] %vm721_vm2, %v2148_v57 }
 0x100   : > { %v2152_v59 = vpop.eup %2151  ;;  %735 = vst.msk [vmem:[#allocation2 + $0x68] sm:$0xff] %vm721_vm2, %v2150_v58 }
 0x101   : > { %v2154_v60 = vpop.eup %2153  ;;  %751 = vst.msk [vmem:[#allocation2 + $0xe8] sm:$0xff] %vm721_vm2, %v2152_v59 }
 0x102   : > { %v2156_v61 = vpop.eup %2155  ;;  %734 = vst.msk [vmem:[#allocation2 + $0x60] sm:$0xff] %vm721_vm2, %v2154_v60 }
 0x103   : > { %v2158_v62 = vpop.eup %2157  ;;  %750 = vst.msk [vmem:[#allocation2 + $0xe0] sm:$0xff] %vm721_vm2, %v2156_v61 }
 0x104   : > { %v2160_v63 = vpop.eup %2159  ;;  %737 = vst.msk [vmem:[#allocation2 + $0x78] sm:$0xff] %vm721_vm2, %v2158_v62 }
 0x105   : > { %v2162_v0 = vpop.eup %2161  ;;  %753 = vst.msk [vmem:[#allocation2 + $0xf8] sm:$0xff] %vm721_vm2, %v2160_v63 }
 0x106   : > { %v2164_v1 = vpop.eup %2163  ;;  %736 = vst.msk [vmem:[#allocation2 + $0x70] sm:$0xff] %vm721_vm2, %v2162_v0 }
 0x107   : > { %752 = vst.msk [vmem:[#allocation2 + $0xf0] sm:$0xff] %vm721_vm2, %v2164_v1 }
 0x108 PF: > { %v789_v2 = vld [vmem:[%s2357_s13 + $0x18] sm:$0xff]  ;;  %v788_v3 = vld [vmem:[%s2357_s13 + $0x10] sm:$0xff]  ;;  %v787_v4 = vld [vmem:[%s2357_s13 + $0x8] sm:$0xff]  ;;  %vm797_vm3 = vcmask 261120   ;;  %p1744_p6 = scmp.ne.s32.totalorder %s2271_s24, 1 }
 0x109   : > { %1938 = vmatprep.subr.mxu0 %v789_v2  ;;  %2052 = vmatprep.subr.mxu1 %v789_v2  ;;  %v786_v5 = vld [vmem:[%s2357_s13] sm:$0xff]  ;;  %v755_v8 = vld [vmem:[#allocation2 + $0x8] sm:$0xff]  ;;  %v756_v10 = vld [vmem:[#allocation2 + $0x10] sm:$0xff] }
 0x10a   : > { %1939 = vmatpush3.msra.mxu0 %v789_v2  ;;  %2056 = vmatpush3.msra.mxu1 %v789_v2  ;;  %v754_v6 = vld [vmem:[#allocation2] sm:$0xff]  ;;  %v771_v9 = vld [vmem:[#allocation2 + $0x88] sm:$0xff]  ;;  %v772_v11 = vld [vmem:[#allocation2 + $0x90] sm:$0xff] }
 0x10b   : > { %1940 = vmatprep.subr.mxu0 %v788_v3  ;;  %2053 = vmatprep.subr.mxu1 %v788_v3  ;;  %v770_v7 = vld [vmem:[#allocation2 + $0x80] sm:$0xff]  ;;  %v757_v12 = vld [vmem:[#allocation2 + $0x18] sm:$0xff]  ;;  %v759_v16 = vld [vmem:[#allocation2 + $0x28] sm:$0xff] }
 0x10c   : > { %1941 = vmatpush3.msra.mxu0 %v788_v3  ;;  %2057 = vmatpush3.msra.mxu1 %v788_v3  ;;  %v773_v13 = vld [vmem:[#allocation2 + $0x98] sm:$0xff]  ;;  %v758_v14 = vld [vmem:[#allocation2 + $0x20] sm:$0xff]  ;;  %v775_v17 = vld [vmem:[#allocation2 + $0xa8] sm:$0xff] }
 0x10d   : > { %1942 = vmatprep.subr.mxu0 %v787_v4  ;;  %2054 = vmatprep.subr.mxu1 %v787_v4  ;;  %v774_v15 = vld [vmem:[#allocation2 + $0xa0] sm:$0xff]  ;;  %v760_v18 = vld [vmem:[#allocation2 + $0x30] sm:$0xff]  ;;  %v761_v20 = vld [vmem:[#allocation2 + $0x38] sm:$0xff] }
 0x10e   : > { %1943 = vmatpush3.msra.mxu0 %v787_v4  ;;  %2058 = vmatpush3.msra.mxu1 %v787_v4  ;;  %v776_v19 = vld [vmem:[#allocation2 + $0xb0] sm:$0xff]  ;;  %v777_v21 = vld [vmem:[#allocation2 + $0xb8] sm:$0xff]  ;;  %v762_v22 = vld [vmem:[#allocation2 + $0x40] sm:$0xff] }
 0x10f   : > { %1944 = vmatprep.subr.mxu0 %v786_v5  ;;  %2055 = vmatprep.subr.mxu1 %v786_v5  ;;  %v778_v23 = vld [vmem:[#allocation2 + $0xc0] sm:$0xff]  ;;  %v763_v24 = vld [vmem:[#allocation2 + $0x48] sm:$0xff]  ;;  %v764_v26 = vld [vmem:[#allocation2 + $0x50] sm:$0xff] }
 0x110   : > { %1945 = vmatpush3.msra.mxu0 %v786_v5  ;;  %2059 = vmatpush3.msra.mxu1 %v786_v5  ;;  %v779_v25 = vld [vmem:[#allocation2 + $0xc8] sm:$0xff]  ;;  %v780_v27 = vld [vmem:[#allocation2 + $0xd0] sm:$0xff]  ;;  %v765_v28 = vld [vmem:[#allocation2 + $0x58] sm:$0xff] }
 0x111   : > { %1946 = vmatprep.mubr.msk.f32.mxu0 %vm797_vm3, %v754_v6  ;;  %1970 = vmatprep.mubr.msk.f32.mxu1 %vm797_vm3, %v770_v7  ;;  %v781_v29 = vld [vmem:[#allocation2 + $0xd8] sm:$0xff]  ;;  %v766_v30 = vld [vmem:[#allocation2 + $0x60] sm:$0xff]  ;;  %v767_v32 = vld [vmem:[#allocation2 + $0x68] sm:$0xff] }
 0x112   : > { %1947 = vmatmul.mubr.msk.f32.vlgmr.msra.gmra.mxu0 %vm797_vm3, %v755_v8  ;;  %1971 = vmatmul.mubr.msk.f32.vlgmr.msra.gmra.mxu1 %vm797_vm3, %v771_v9  ;;  %v782_v31 = vld [vmem:[#allocation2 + $0xe0] sm:$0xff]  ;;  %v783_v34 = vld [vmem:[#allocation2 + $0xe8] sm:$0xff]  ;;  %v768_v35 = vld [vmem:[#allocation2 + $0x70] sm:$0xff] }
 0x113   : > { %1949 = vmatprep.mubr.msk.f32.mxu0 %vm797_vm3, %v756_v10  ;;  %1973 = vmatprep.mubr.msk.f32.mxu1 %vm797_vm3, %v772_v11  ;;  %v784_v36 = vld [vmem:[#allocation2 + $0xf0] sm:$0xff]  ;;  %v769_v37 = vld [vmem:[#allocation2 + $0x78] sm:$0xff]  ;;  %v2601_v39 = vld [vmem:[%s317_s10] ss:$0 sm:$0xff] }
 0x114   : > { %v785_v38 = vld [vmem:[#allocation2 + $0xf8] sm:$0xff] }
 0x116   : > { %1950 = vmatmul.mubr.msk.f32.gmra.mxu0 %vm797_vm3, %v757_v12  ;;  %1974 = vmatmul.mubr.msk.f32.gmra.mxu1 %vm797_vm3, %v773_v13 }
 0x117   : > { %1952 = vmatprep.mubr.msk.f32.mxu0 %vm797_vm3, %v758_v14  ;;  %1976 = vmatprep.mubr.msk.f32.mxu1 %vm797_vm3, %v774_v15 }
 0x11a   : > { %1953 = vmatmul.mubr.msk.f32.gmra.mxu0 %vm797_vm3, %v759_v16  ;;  %1977 = vmatmul.mubr.msk.f32.gmra.mxu1 %vm797_vm3, %v775_v17 }
 0x11b   : > { %1955 = vmatprep.mubr.msk.f32.mxu0 %vm797_vm3, %v760_v18  ;;  %1979 = vmatprep.mubr.msk.f32.mxu1 %vm797_vm3, %v776_v19 }
 0x11e   : > { %1956 = vmatmul.mubr.msk.f32.gmra.mxu0 %vm797_vm3, %v761_v20  ;;  %1980 = vmatmul.mubr.msk.f32.gmra.mxu1 %vm797_vm3, %v777_v21 }
 0x11f   : > { %1958 = vmatprep.mubr.msk.f32.mxu0 %vm797_vm3, %v762_v22  ;;  %1982 = vmatprep.mubr.msk.f32.mxu1 %vm797_vm3, %v778_v23 }
 0x122   : > { %1959 = vmatmul.mubr.msk.f32.gmra.mxu0 %vm797_vm3, %v763_v24  ;;  %1983 = vmatmul.mubr.msk.f32.gmra.mxu1 %vm797_vm3, %v779_v25 }
 0x123   : > { %1961 = vmatprep.mubr.msk.f32.mxu0 %vm797_vm3, %v764_v26  ;;  %1985 = vmatprep.mubr.msk.f32.mxu1 %vm797_vm3, %v780_v27 }
 0x126   : > { %1962 = vmatmul.mubr.msk.f32.gmra.mxu0 %vm797_vm3, %v765_v28  ;;  %1986 = vmatmul.mubr.msk.f32.gmra.mxu1 %vm797_vm3, %v781_v29 }
 0x127   : > { %1964 = vmatprep.mubr.msk.f32.mxu0 %vm797_vm3, %v766_v30  ;;  %1988 = vmatprep.mubr.msk.f32.mxu1 %vm797_vm3, %v782_v31 }
 0x12a   : > { %1965 = vmatmul.mubr.msk.f32.gmra.mxu0 %vm797_vm3, %v767_v32  ;;  %1989 = vmatmul.mubr.msk.f32.gmra.mxu1 %vm797_vm3, %v783_v34 }
 0x12b   : > { %1967 = vmatprep.mubr.msk.f32.mxu0 %vm797_vm3, %v768_v35  ;;  %1991 = vmatprep.mubr.msk.f32.mxu1 %vm797_vm3, %v784_v36 }
 0x12e   : > { %1968 = vmatmul.mubr.msk.f32.gmra.mxu0 %vm797_vm3, %v769_v37  ;;  %1992 = vmatmul.mubr.msk.f32.gmra.mxu1 %vm797_vm3, %v785_v38 }
 0x1d2   : > { %v1948_v40 = vpop.f32.mrf.mxu0  ;;  %v1972_v41 = vpop.f32.mrf.mxu1 }
 0x1d3   : > { %v966_v42 = vadd.f32 %v1948_v40, %v2601_v39  ;;  %v1046_v43 = vadd.f32 %v1972_v41, %v2601_v39 }
 0x1d4   : > { %v960_v44 = vpop.f32.mrf.mxu0  ;;  %v1040_v45 = vpop.f32.mrf.mxu1 }
 0x1d5   : > { %2165 = vtanh.f32 %v966_v42  ;;  %v961_v46 = vadd.f32 %v2601_v39, %v960_v44  ;;  %v1041_v47 = vadd.f32 %v2601_v39, %v1040_v45 }
 0x1d6   : > { %2167 = vtanh.f32 %v1046_v43  ;;  %v1951_v48 = vpop.f32.mrf.mxu0  ;;  %v1975_v49 = vpop.f32.mrf.mxu1 }
 0x1d7   : > { %2169 = vtanh.f32 %v961_v46  ;;  %v976_v50 = vadd.f32 %v1951_v48, %v2601_v39  ;;  %v1056_v51 = vadd.f32 %v1975_v49, %v2601_v39 }
 0x1d8   : > { %2171 = vtanh.f32 %v1041_v47  ;;  %v970_v52 = vpop.f32.mrf.mxu0  ;;  %v1050_v53 = vpop.f32.mrf.mxu1 }
 0x1d9   : > { %2173 = vtanh.f32 %v976_v50  ;;  %v971_v54 = vadd.f32 %v2601_v39, %v970_v52  ;;  %v1051_v55 = vadd.f32 %v2601_v39, %v1050_v53 }
 0x1da   : > { %2175 = vtanh.f32 %v1056_v51  ;;  %v1954_v56 = vpop.f32.mrf.mxu0  ;;  %v1978_v33 = vpop.f32.mrf.mxu1 }
 0x1db   : > { %2177 = vtanh.f32 %v971_v54  ;;  %v986_v57 = vadd.f32 %v1954_v56, %v2601_v39  ;;  %v1066_v58 = vadd.f32 %v1978_v33, %v2601_v39 }
 0x1dc   : > { %2179 = vtanh.f32 %v1051_v55  ;;  %v980_v59 = vpop.f32.mrf.mxu0  ;;  %v1060_v60 = vpop.f32.mrf.mxu1 }
 0x1dd   : > { %2181 = vtanh.f32 %v986_v57  ;;  %v981_v61 = vadd.f32 %v2601_v39, %v980_v59  ;;  %v1061_v62 = vadd.f32 %v2601_v39, %v1060_v60 }
 0x1de   : > { %2183 = vtanh.f32 %v1066_v58  ;;  %v1957_v63 = vpop.f32.mrf.mxu0  ;;  %v1981_v0 = vpop.f32.mrf.mxu1 }
 0x1df   : > { %2185 = vtanh.f32 %v981_v61  ;;  %v996_v1 = vadd.f32 %v1957_v63, %v2601_v39  ;;  %v1076_v2 = vadd.f32 %v1981_v0, %v2601_v39 }
 0x1e0   : > { %2187 = vtanh.f32 %v1061_v62  ;;  %v990_v3 = vpop.f32.mrf.mxu0  ;;  %v1070_v4 = vpop.f32.mrf.mxu1 }
 0x1e1   : > { %2189 = vtanh.f32 %v996_v1  ;;  %v991_v5 = vadd.f32 %v2601_v39, %v990_v3  ;;  %v1071_v6 = vadd.f32 %v2601_v39, %v1070_v4 }
 0x1e2   : > { %v2166_v7 = vpop.eup %2165  ;;  %2191 = vtanh.f32 %v1076_v2  ;;  %v1960_v8 = vpop.f32.mrf.mxu0 }
 0x1e3   : > { %v1984_v9 = vpop.f32.mrf.mxu1  ;;  %v2168_v10 = vpop.eup %2167  ;;  %1152 = vst.msk [vmem:[#allocation2 + $0x8] sm:$0xff] %vm797_vm3, %v2166_v7  ;;  %2193 = vtanh.f32 %v991_v5  ;;  %v1006_v11 = vadd.f32 %v1960_v8, %v2601_v39 }
 0x1e4   : > { %v1086_v12 = vadd.f32 %v1984_v9, %v2601_v39  ;;  %v2170_v13 = vpop.eup %2169  ;;  %1168 = vst.msk [vmem:[#allocation2 + $0x88] sm:$0xff] %vm797_vm3, %v2168_v10  ;;  %2195 = vtanh.f32 %v1071_v6  ;;  %v1000_v14 = vpop.f32.mrf.mxu0 }
 0x1e5   : > { %v1080_v15 = vpop.f32.mrf.mxu1  ;;  %v2172_v16 = vpop.eup %2171  ;;  %1151 = vst.msk [vmem:[#allocation2] sm:$0xff] %vm797_vm3, %v2170_v13  ;;  %2197 = vtanh.f32 %v1006_v11  ;;  %v1001_v17 = vadd.f32 %v2601_v39, %v1000_v14 }
 0x1e6   : > { %v1081_v18 = vadd.f32 %v2601_v39, %v1080_v15  ;;  %v2174_v19 = vpop.eup %2173  ;;  %1167 = vst.msk [vmem:[#allocation2 + $0x80] sm:$0xff] %vm797_vm3, %v2172_v16  ;;  %2199 = vtanh.f32 %v1086_v12  ;;  %v1963_v20 = vpop.f32.mrf.mxu0 }
 0x1e7   : > { %v1987_v21 = vpop.f32.mrf.mxu1  ;;  %v2176_v22 = vpop.eup %2175  ;;  %1154 = vst.msk [vmem:[#allocation2 + $0x18] sm:$0xff] %vm797_vm3, %v2174_v19  ;;  %2201 = vtanh.f32 %v1001_v17  ;;  %v1016_v23 = vadd.f32 %v1963_v20, %v2601_v39 }
 0x1e8   : > { %v1096_v24 = vadd.f32 %v1987_v21, %v2601_v39  ;;  %v2178_v25 = vpop.eup %2177  ;;  %1170 = vst.msk [vmem:[#allocation2 + $0x98] sm:$0xff] %vm797_vm3, %v2176_v22  ;;  %2203 = vtanh.f32 %v1081_v18  ;;  %v1010_v26 = vpop.f32.mrf.mxu0 }
 0x1e9   : > { %v1090_v27 = vpop.f32.mrf.mxu1  ;;  %v2180_v28 = vpop.eup %2179  ;;  %1153 = vst.msk [vmem:[#allocation2 + $0x10] sm:$0xff] %vm797_vm3, %v2178_v25  ;;  %2205 = vtanh.f32 %v1016_v23  ;;  %v1011_v29 = vadd.f32 %v2601_v39, %v1010_v26 }
 0x1ea   : > { %v1091_v30 = vadd.f32 %v2601_v39, %v1090_v27  ;;  %v2182_v31 = vpop.eup %2181  ;;  %1169 = vst.msk [vmem:[#allocation2 + $0x90] sm:$0xff] %vm797_vm3, %v2180_v28  ;;  %2207 = vtanh.f32 %v1096_v24  ;;  %v1966_v32 = vpop.f32.mrf.mxu0 }
 0x1eb   : > { %v1990_v34 = vpop.f32.mrf.mxu1  ;;  %v2184_v35 = vpop.eup %2183  ;;  %1156 = vst.msk [vmem:[#allocation2 + $0x28] sm:$0xff] %vm797_vm3, %v2182_v31  ;;  %2209 = vtanh.f32 %v1011_v29  ;;  %v1026_v36 = vadd.f32 %v1966_v32, %v2601_v39 }
 0x1ec   : > { %v1106_v37 = vadd.f32 %v1990_v34, %v2601_v39  ;;  %v2186_v38 = vpop.eup %2185  ;;  %1172 = vst.msk [vmem:[#allocation2 + $0xa8] sm:$0xff] %vm797_vm3, %v2184_v35  ;;  %2211 = vtanh.f32 %v1091_v30  ;;  %v1020_v40 = vpop.f32.mrf.mxu0 }
 0x1ed   : > { %v1100_v41 = vpop.f32.mrf.mxu1  ;;  %v2188_v42 = vpop.eup %2187  ;;  %1155 = vst.msk [vmem:[#allocation2 + $0x20] sm:$0xff] %vm797_vm3, %v2186_v38  ;;  %2213 = vtanh.f32 %v1026_v36  ;;  %v1021_v43 = vadd.f32 %v2601_v39, %v1020_v40 }
 0x1ee   : > { %v1101_v44 = vadd.f32 %v2601_v39, %v1100_v41  ;;  %v2190_v45 = vpop.eup %2189  ;;  %1171 = vst.msk [vmem:[#allocation2 + $0xa0] sm:$0xff] %vm797_vm3, %v2188_v42  ;;  %2215 = vtanh.f32 %v1106_v37  ;;  %v1969_v46 = vpop.f32.mrf.mxu0 }
 0x1ef   : > { %v1993_v47 = vpop.f32.mrf.mxu1  ;;  %v2192_v48 = vpop.eup %2191  ;;  %1158 = vst.msk [vmem:[#allocation2 + $0x38] sm:$0xff] %vm797_vm3, %v2190_v45  ;;  %2217 = vtanh.f32 %v1021_v43  ;;  %v1036_v49 = vadd.f32 %v1969_v46, %v2601_v39 }
 0x1f0   : > { %v1116_v50 = vadd.f32 %v1993_v47, %v2601_v39  ;;  %v2194_v51 = vpop.eup %2193  ;;  %1174 = vst.msk [vmem:[#allocation2 + $0xb8] sm:$0xff] %vm797_vm3, %v2192_v48  ;;  %2219 = vtanh.f32 %v1101_v44  ;;  %v1030_v52 = vpop.f32.mrf.mxu0 }
 0x1f1   : > { %v1110_v53 = vpop.f32.mrf.mxu1  ;;  %v2196_v54 = vpop.eup %2195  ;;  %1157 = vst.msk [vmem:[#allocation2 + $0x30] sm:$0xff] %vm797_vm3, %v2194_v51  ;;  %2221 = vtanh.f32 %v1036_v49  ;;  %v1031_v55 = vadd.f32 %v2601_v39, %v1030_v52 }
 0x1f2   : > { %v1111_v56 = vadd.f32 %v2601_v39, %v1110_v53  ;;  %v2198_v33 = vpop.eup %2197  ;;  %1173 = vst.msk [vmem:[#allocation2 + $0xb0] sm:$0xff] %vm797_vm3, %v2196_v54  ;;  %2223 = vtanh.f32 %v1116_v50 }
 0x1f3   : > { %v2200_v57 = vpop.eup %2199  ;;  %1160 = vst.msk [vmem:[#allocation2 + $0x48] sm:$0xff] %vm797_vm3, %v2198_v33  ;;  %2225 = vtanh.f32 %v1031_v55 }
 0x1f4   : > { %v2202_v58 = vpop.eup %2201  ;;  %1176 = vst.msk [vmem:[#allocation2 + $0xc8] sm:$0xff] %vm797_vm3, %v2200_v57  ;;  %2227 = vtanh.f32 %v1111_v56 }
 0x1f5   : > { %v2204_v59 = vpop.eup %2203  ;;  %1159 = vst.msk [vmem:[#allocation2 + $0x40] sm:$0xff] %vm797_vm3, %v2202_v58 }
 0x1f6   : > { %v2206_v60 = vpop.eup %2205  ;;  %1175 = vst.msk [vmem:[#allocation2 + $0xc0] sm:$0xff] %vm797_vm3, %v2204_v59 }
 0x1f7   : > { %v2208_v61 = vpop.eup %2207  ;;  %1162 = vst.msk [vmem:[#allocation2 + $0x58] sm:$0xff] %vm797_vm3, %v2206_v60 }
 0x1f8   : > { %v2210_v39 = vpop.eup %2209  ;;  %1178 = vst.msk [vmem:[#allocation2 + $0xd8] sm:$0xff] %vm797_vm3, %v2208_v61 }
 0x1f9   : > { %v2212_v62 = vpop.eup %2211  ;;  %1161 = vst.msk [vmem:[#allocation2 + $0x50] sm:$0xff] %vm797_vm3, %v2210_v39 }
 0x1fa   : > { %v2214_v63 = vpop.eup %2213  ;;  %1177 = vst.msk [vmem:[#allocation2 + $0xd0] sm:$0xff] %vm797_vm3, %v2212_v62 }
 0x1fb   : > { %v2216_v0 = vpop.eup %2215  ;;  %1164 = vst.msk [vmem:[#allocation2 + $0x68] sm:$0xff] %vm797_vm3, %v2214_v63 }
 0x1fc   : > { %v2218_v1 = vpop.eup %2217  ;;  %1180 = vst.msk [vmem:[#allocation2 + $0xe8] sm:$0xff] %vm797_vm3, %v2216_v0 }
 0x1fd   : > { %v2220_v2 = vpop.eup %2219  ;;  %1163 = vst.msk [vmem:[#allocation2 + $0x60] sm:$0xff] %vm797_vm3, %v2218_v1 }
 0x1fe   : > { %v2222_v3 = vpop.eup %2221  ;;  %1179 = vst.msk [vmem:[#allocation2 + $0xe0] sm:$0xff] %vm797_vm3, %v2220_v2  ;;  %1186 = sbr.rel (%p1744_p6) target bundleno = 751 (0x2ef), region = 56 }
 0x1ff   : > { %v2224_v4 = vpop.eup %2223  ;;  %1166 = vst.msk [vmem:[#allocation2 + $0x78] sm:$0xff] %vm797_vm3, %v2222_v3 }
 0x200   : > { %v2226_v5 = vpop.eup %2225  ;;  %1182 = vst.msk [vmem:[#allocation2 + $0xf8] sm:$0xff] %vm797_vm3, %v2224_v4 }
 0x201   : > { %v2228_v6 = vpop.eup %2227  ;;  %1165 = vst.msk [vmem:[#allocation2 + $0x70] sm:$0xff] %vm797_vm3, %v2226_v5 }
 0x202   : > { %1181 = vst.msk [vmem:[#allocation2 + $0xf0] sm:$0xff] %vm797_vm3, %v2228_v6 }
 0x203   : > { %v1222_v7 = vld [vmem:[%s2780_s5 + $0x18] sm:$0xff]  ;;  %v1221_v8 = vld [vmem:[%s2780_s5 + $0x10] sm:$0xff]  ;;  %v1220_v9 = vld [vmem:[%s2780_s5 + $0x8] sm:$0xff] }
 0x204   : > { %1994 = vmatprep.subr.mxu0 %v1222_v7  ;;  %2060 = vmatprep.subr.mxu1 %v1222_v7  ;;  %v1219_v10 = vld [vmem:[%s2780_s5] sm:$0xff]  ;;  %v1188_v13 = vld [vmem:[#allocation2 + $0x8] sm:$0xff]  ;;  %v1189_v15 = vld [vmem:[#allocation2 + $0x10] sm:$0xff] }
 0x205   : > { %1995 = vmatpush3.msra.mxu0 %v1222_v7  ;;  %2064 = vmatpush3.msra.mxu1 %v1222_v7  ;;  %v1187_v11 = vld [vmem:[#allocation2] sm:$0xff]  ;;  %v1204_v14 = vld [vmem:[#allocation2 + $0x88] sm:$0xff]  ;;  %v1205_v16 = vld [vmem:[#allocation2 + $0x90] sm:$0xff] }
 0x206   : > { %1996 = vmatprep.subr.mxu0 %v1221_v8  ;;  %2061 = vmatprep.subr.mxu1 %v1221_v8  ;;  %v1203_v12 = vld [vmem:[#allocation2 + $0x80] sm:$0xff]  ;;  %v1190_v17 = vld [vmem:[#allocation2 + $0x18] sm:$0xff]  ;;  %v1192_v21 = vld [vmem:[#allocation2 + $0x28] sm:$0xff] }
 0x207   : > { %1997 = vmatpush3.msra.mxu0 %v1221_v8  ;;  %2065 = vmatpush3.msra.mxu1 %v1221_v8  ;;  %v1206_v18 = vld [vmem:[#allocation2 + $0x98] sm:$0xff]  ;;  %v1191_v19 = vld [vmem:[#allocation2 + $0x20] sm:$0xff]  ;;  %v1208_v22 = vld [vmem:[#allocation2 + $0xa8] sm:$0xff] }
 0x208   : > { %1998 = vmatprep.subr.mxu0 %v1220_v9  ;;  %2062 = vmatprep.subr.mxu1 %v1220_v9  ;;  %v1207_v20 = vld [vmem:[#allocation2 + $0xa0] sm:$0xff]  ;;  %v1193_v23 = vld [vmem:[#allocation2 + $0x30] sm:$0xff]  ;;  %v1194_v25 = vld [vmem:[#allocation2 + $0x38] sm:$0xff] }
 0x209   : > { %1999 = vmatpush3.msra.mxu0 %v1220_v9  ;;  %2066 = vmatpush3.msra.mxu1 %v1220_v9  ;;  %v1209_v24 = vld [vmem:[#allocation2 + $0xb0] sm:$0xff]  ;;  %v1210_v26 = vld [vmem:[#allocation2 + $0xb8] sm:$0xff]  ;;  %v1195_v27 = vld [vmem:[#allocation2 + $0x40] sm:$0xff] }
 0x20a   : > { %2000 = vmatprep.subr.mxu0 %v1219_v10  ;;  %2063 = vmatprep.subr.mxu1 %v1219_v10  ;;  %v1211_v28 = vld [vmem:[#allocation2 + $0xc0] sm:$0xff]  ;;  %v1196_v29 = vld [vmem:[#allocation2 + $0x48] sm:$0xff]  ;;  %v1197_v31 = vld [vmem:[#allocation2 + $0x50] sm:$0xff] }
 0x20b   : > { %2001 = vmatpush3.msra.mxu0 %v1219_v10  ;;  %2067 = vmatpush3.msra.mxu1 %v1219_v10  ;;  %v1212_v30 = vld [vmem:[#allocation2 + $0xc8] sm:$0xff]  ;;  %v1213_v32 = vld [vmem:[#allocation2 + $0xd0] sm:$0xff]  ;;  %v1198_v34 = vld [vmem:[#allocation2 + $0x58] sm:$0xff] }
 0x20c   : > { %2002 = vmatprep.mubr.msk.f32.mxu0 %vm797_vm3, %v1187_v11  ;;  %2026 = vmatprep.mubr.msk.f32.mxu1 %vm797_vm3, %v1203_v12  ;;  %v1214_v35 = vld [vmem:[#allocation2 + $0xd8] sm:$0xff]  ;;  %v1199_v36 = vld [vmem:[#allocation2 + $0x60] sm:$0xff]  ;;  %v1200_v38 = vld [vmem:[#allocation2 + $0x68] sm:$0xff] }
 0x20d   : > { %2003 = vmatmul.mubr.msk.f32.vlgmr.msra.gmra.mxu0 %vm797_vm3, %v1188_v13  ;;  %2027 = vmatmul.mubr.msk.f32.vlgmr.msra.gmra.mxu1 %vm797_vm3, %v1204_v14  ;;  %v1215_v37 = vld [vmem:[#allocation2 + $0xe0] sm:$0xff]  ;;  %v1216_v40 = vld [vmem:[#allocation2 + $0xe8] sm:$0xff]  ;;  %v1201_v41 = vld [vmem:[#allocation2 + $0x70] sm:$0xff] }
 0x20e   : > { %2005 = vmatprep.mubr.msk.f32.mxu0 %vm797_vm3, %v1189_v15  ;;  %2029 = vmatprep.mubr.msk.f32.mxu1 %vm797_vm3, %v1205_v16  ;;  %v1217_v42 = vld [vmem:[#allocation2 + $0xf0] sm:$0xff]  ;;  %v1202_v43 = vld [vmem:[#allocation2 + $0x78] sm:$0xff]  ;;  %v2715_v45 = vld [vmem:[%s2781_s6] ss:$0 sm:$0xff] }
 0x20f   : > { %v1218_v44 = vld [vmem:[#allocation2 + $0xf8] sm:$0xff] }
 0x211   : > { %2006 = vmatmul.mubr.msk.f32.gmra.mxu0 %vm797_vm3, %v1190_v17  ;;  %2030 = vmatmul.mubr.msk.f32.gmra.mxu1 %vm797_vm3, %v1206_v18 }
 0x212   : > { %2008 = vmatprep.mubr.msk.f32.mxu0 %vm797_vm3, %v1191_v19  ;;  %2032 = vmatprep.mubr.msk.f32.mxu1 %vm797_vm3, %v1207_v20 }
 0x215   : > { %2009 = vmatmul.mubr.msk.f32.gmra.mxu0 %vm797_vm3, %v1192_v21  ;;  %2033 = vmatmul.mubr.msk.f32.gmra.mxu1 %vm797_vm3, %v1208_v22 }
 0x216   : > { %2011 = vmatprep.mubr.msk.f32.mxu0 %vm797_vm3, %v1193_v23  ;;  %2035 = vmatprep.mubr.msk.f32.mxu1 %vm797_vm3, %v1209_v24 }
 0x219   : > { %2012 = vmatmul.mubr.msk.f32.gmra.mxu0 %vm797_vm3, %v1194_v25  ;;  %2036 = vmatmul.mubr.msk.f32.gmra.mxu1 %vm797_vm3, %v1210_v26 }
 0x21a   : > { %2014 = vmatprep.mubr.msk.f32.mxu0 %vm797_vm3, %v1195_v27  ;;  %2038 = vmatprep.mubr.msk.f32.mxu1 %vm797_vm3, %v1211_v28 }
 0x21d   : > { %2015 = vmatmul.mubr.msk.f32.gmra.mxu0 %vm797_vm3, %v1196_v29  ;;  %2039 = vmatmul.mubr.msk.f32.gmra.mxu1 %vm797_vm3, %v1212_v30 }
 0x21e   : > { %2017 = vmatprep.mubr.msk.f32.mxu0 %vm797_vm3, %v1197_v31  ;;  %2041 = vmatprep.mubr.msk.f32.mxu1 %vm797_vm3, %v1213_v32 }
 0x221   : > { %2018 = vmatmul.mubr.msk.f32.gmra.mxu0 %vm797_vm3, %v1198_v34  ;;  %2042 = vmatmul.mubr.msk.f32.gmra.mxu1 %vm797_vm3, %v1214_v35 }
 0x222   : > { %2020 = vmatprep.mubr.msk.f32.mxu0 %vm797_vm3, %v1199_v36  ;;  %2044 = vmatprep.mubr.msk.f32.mxu1 %vm797_vm3, %v1215_v37 }
 0x225   : > { %2021 = vmatmul.mubr.msk.f32.gmra.mxu0 %vm797_vm3, %v1200_v38  ;;  %2045 = vmatmul.mubr.msk.f32.gmra.mxu1 %vm797_vm3, %v1216_v40 }
 0x226   : > { %2023 = vmatprep.mubr.msk.f32.mxu0 %vm797_vm3, %v1201_v41  ;;  %2047 = vmatprep.mubr.msk.f32.mxu1 %vm797_vm3, %v1217_v42 }
 0x229   : > { %2024 = vmatmul.mubr.msk.f32.gmra.mxu0 %vm797_vm3, %v1202_v43  ;;  %2048 = vmatmul.mubr.msk.f32.gmra.mxu1 %vm797_vm3, %v1218_v44 }
 0x2cd   : > { %v2004_v46 = vpop.f32.mrf.mxu0  ;;  %v2028_v47 = vpop.f32.mrf.mxu1 }
 0x2ce   : > { %v1398_v48 = vadd.f32 %v2004_v46, %v2715_v45  ;;  %v1478_v49 = vadd.f32 %v2028_v47, %v2715_v45 }
 0x2cf   : > { %v1392_v50 = vpop.f32.mrf.mxu0  ;;  %v1472_v51 = vpop.f32.mrf.mxu1 }
 0x2d0   : > { %1552 = vst [vmem:[#allocation3 + $0x8] sm:$0xff] %v1398_v48  ;;  %1568 = vst [vmem:[#allocation3 + $0x88] sm:$0xff] %v1478_v49  ;;  %v1393_v52 = vadd.f32 %v2715_v45, %v1392_v50  ;;  %v1473_v53 = vadd.f32 %v2715_v45, %v1472_v51 }
 0x2d1   : > { %v2007_v54 = vpop.f32.mrf.mxu0  ;;  %v2031_v55 = vpop.f32.mrf.mxu1 }
 0x2d2   : > { %1551 = vst [vmem:[#allocation3] sm:$0xff] %v1393_v52  ;;  %1567 = vst [vmem:[#allocation3 + $0x80] sm:$0xff] %v1473_v53  ;;  %v1408_v56 = vadd.f32 %v2007_v54, %v2715_v45  ;;  %v1488_v33 = vadd.f32 %v2031_v55, %v2715_v45 }
 0x2d3   : > { %v1402_v57 = vpop.f32.mrf.mxu0  ;;  %v1482_v58 = vpop.f32.mrf.mxu1 }
 0x2d4   : > { %1554 = vst [vmem:[#allocation3 + $0x18] sm:$0xff] %v1408_v56  ;;  %1570 = vst [vmem:[#allocation3 + $0x98] sm:$0xff] %v1488_v33  ;;  %v1403_v59 = vadd.f32 %v2715_v45, %v1402_v57  ;;  %v1483_v60 = vadd.f32 %v2715_v45, %v1482_v58 }
 0x2d5   : > { %v2010_v61 = vpop.f32.mrf.mxu0  ;;  %v2034_v39 = vpop.f32.mrf.mxu1 }
 0x2d6   : > { %1553 = vst [vmem:[#allocation3 + $0x10] sm:$0xff] %v1403_v59  ;;  %1569 = vst [vmem:[#allocation3 + $0x90] sm:$0xff] %v1483_v60  ;;  %v1418_v62 = vadd.f32 %v2010_v61, %v2715_v45  ;;  %v1498_v63 = vadd.f32 %v2034_v39, %v2715_v45 }
 0x2d7   : > { %v1412_v0 = vpop.f32.mrf.mxu0  ;;  %v1492_v1 = vpop.f32.mrf.mxu1 }
 0x2d8   : > { %1556 = vst [vmem:[#allocation3 + $0x28] sm:$0xff] %v1418_v62  ;;  %1572 = vst [vmem:[#allocation3 + $0xa8] sm:$0xff] %v1498_v63  ;;  %v1413_v2 = vadd.f32 %v2715_v45, %v1412_v0  ;;  %v1493_v3 = vadd.f32 %v2715_v45, %v1492_v1 }
 0x2d9   : > { %v2013_v4 = vpop.f32.mrf.mxu0  ;;  %v2037_v5 = vpop.f32.mrf.mxu1 }
 0x2da   : > { %1555 = vst [vmem:[#allocation3 + $0x20] sm:$0xff] %v1413_v2  ;;  %1571 = vst [vmem:[#allocation3 + $0xa0] sm:$0xff] %v1493_v3  ;;  %v1428_v6 = vadd.f32 %v2013_v4, %v2715_v45  ;;  %v1508_v7 = vadd.f32 %v2037_v5, %v2715_v45 }
 0x2db   : > { %v1422_v8 = vpop.f32.mrf.mxu0  ;;  %v1502_v9 = vpop.f32.mrf.mxu1 }
 0x2dc   : > { %1558 = vst [vmem:[#allocation3 + $0x38] sm:$0xff] %v1428_v6  ;;  %1574 = vst [vmem:[#allocation3 + $0xb8] sm:$0xff] %v1508_v7  ;;  %v1423_v10 = vadd.f32 %v2715_v45, %v1422_v8  ;;  %v1503_v11 = vadd.f32 %v2715_v45, %v1502_v9 }
 0x2dd   : > { %v2016_v12 = vpop.f32.mrf.mxu0  ;;  %v2040_v13 = vpop.f32.mrf.mxu1 }
 0x2de   : > { %1557 = vst [vmem:[#allocation3 + $0x30] sm:$0xff] %v1423_v10  ;;  %1573 = vst [vmem:[#allocation3 + $0xb0] sm:$0xff] %v1503_v11  ;;  %v1438_v14 = vadd.f32 %v2016_v12, %v2715_v45  ;;  %v1518_v15 = vadd.f32 %v2040_v13, %v2715_v45 }
 0x2df   : > { %v1432_v16 = vpop.f32.mrf.mxu0  ;;  %v1512_v17 = vpop.f32.mrf.mxu1 }
 0x2e0   : > { %1560 = vst [vmem:[#allocation3 + $0x48] sm:$0xff] %v1438_v14  ;;  %1576 = vst [vmem:[#allocation3 + $0xc8] sm:$0xff] %v1518_v15  ;;  %v1433_v18 = vadd.f32 %v2715_v45, %v1432_v16  ;;  %v1513_v19 = vadd.f32 %v2715_v45, %v1512_v17 }
 0x2e1   : > { %v2019_v20 = vpop.f32.mrf.mxu0  ;;  %v2043_v21 = vpop.f32.mrf.mxu1 }
 0x2e2   : > { %1559 = vst [vmem:[#allocation3 + $0x40] sm:$0xff] %v1433_v18  ;;  %1575 = vst [vmem:[#allocation3 + $0xc0] sm:$0xff] %v1513_v19  ;;  %v1448_v22 = vadd.f32 %v2019_v20, %v2715_v45  ;;  %v1528_v23 = vadd.f32 %v2043_v21, %v2715_v45 }
 0x2e3   : > { %v1442_v24 = vpop.f32.mrf.mxu0  ;;  %v1522_v25 = vpop.f32.mrf.mxu1 }
 0x2e4   : > { %1562 = vst [vmem:[#allocation3 + $0x58] sm:$0xff] %v1448_v22  ;;  %1578 = vst [vmem:[#allocation3 + $0xd8] sm:$0xff] %v1528_v23  ;;  %v1443_v26 = vadd.f32 %v2715_v45, %v1442_v24  ;;  %v1523_v27 = vadd.f32 %v2715_v45, %v1522_v25 }
 0x2e5   : > { %v2022_v28 = vpop.f32.mrf.mxu0  ;;  %v2046_v29 = vpop.f32.mrf.mxu1 }
 0x2e6   : > { %1561 = vst [vmem:[#allocation3 + $0x50] sm:$0xff] %v1443_v26  ;;  %1577 = vst [vmem:[#allocation3 + $0xd0] sm:$0xff] %v1523_v27  ;;  %v1458_v30 = vadd.f32 %v2022_v28, %v2715_v45  ;;  %v1538_v31 = vadd.f32 %v2046_v29, %v2715_v45 }
 0x2e7   : > { %v1452_v32 = vpop.f32.mrf.mxu0  ;;  %v1532_v34 = vpop.f32.mrf.mxu1 }
 0x2e8   : > { %1564 = vst [vmem:[#allocation3 + $0x68] sm:$0xff] %v1458_v30  ;;  %1580 = vst [vmem:[#allocation3 + $0xe8] sm:$0xff] %v1538_v31  ;;  %v1453_v35 = vadd.f32 %v2715_v45, %v1452_v32  ;;  %v1533_v36 = vadd.f32 %v2715_v45, %v1532_v34 }
 0x2e9   : > { %v2025_v37 = vpop.f32.mrf.mxu0  ;;  %v2049_v38 = vpop.f32.mrf.mxu1 }
 0x2ea   : > { %1563 = vst [vmem:[#allocation3 + $0x60] sm:$0xff] %v1453_v35  ;;  %1579 = vst [vmem:[#allocation3 + $0xe0] sm:$0xff] %v1533_v36  ;;  %v1468_v40 = vadd.f32 %v2025_v37, %v2715_v45  ;;  %v1548_v41 = vadd.f32 %v2049_v38, %v2715_v45 }
 0x2eb   : > { %v1462_v42 = vpop.f32.mrf.mxu0  ;;  %v1542_v43 = vpop.f32.mrf.mxu1 }
 0x2ec   : > { %1566 = vst [vmem:[#allocation3 + $0x78] sm:$0xff] %v1468_v40  ;;  %1582 = vst [vmem:[#allocation3 + $0xf8] sm:$0xff] %v1548_v41  ;;  %v1463_v44 = vadd.f32 %v2715_v45, %v1462_v42  ;;  %v1543_v46 = vadd.f32 %v2715_v45, %v1542_v43 }
 0x2ee   : > { %1565 = vst [vmem:[#allocation3 + $0x70] sm:$0xff] %v1463_v44  ;;  %1581 = vst [vmem:[#allocation3 + $0xf0] sm:$0xff] %v1543_v46 }
 0x2ef PF: > { %p2751_p7 = scmp.eq.s32.totalorder %s1669_s27, 1  ;;  %s2281_s16 = smov [#allocation3]  }
 0x2f0   : > { %s1592_s17 = sshll.u32 %s2281_s16, 4  ;;  %s1593_s17 = int_to_ptr.vmem [resolvable:$true] %s1592_s17 }
 0x2f1   : > { %s2229_s18 = scalar_lea.vmem %s1593_s17, 4096  ;;  %p2236_p11 = scmp.lt.s32.totalorder %s1593_s17, %s1593_s17 }
 0x2f2   : > { %p2230_p8 = scmp.ne.s32.totalorder %s1593_s17, %s2229_s18  ;;  %p2237_p12 = scmp.lt.s32.totalorder %s2229_s18, %s2229_s18 }
 0x2f4   : > { %p2231_p9 = pnand %p2230_p8, %p2751_p7  ;;  %p2238_p13 = por %p2237_p12, %p2236_p11 }
 0x2f6   : > { %p2232_p10 = pneg %p2231_p9 }
 0x2f8   : > { %p2239_p0 = pnand %p2238_p13, %p2232_p10 }
 0x2fa   : > { %2242 = shalt.err (!%p2239_p0)
}
 0x2fb   : > { %s2282_s19 = smov 128   ;;  %s2283_s27 = smov 8  }
 0x2fc   : > { %2069 = dma.vmem_to_hbm [thread:$0]  (%p2751_p7), %s1593_s17, 4096, %s2782_s7, [#allocation4], %s2282_s19, %s2282_s19, %s2283_s27  }
 0x2fd   : > { %2266 = dma.done.wait (%p2751_p7), [#allocation4], 4096  }
 0x2fe   : > { %2268 = vsyncadd (%p2751_p7), [#allocation4], 4294963200 }
 0x2ff PF: > { %s18_s26 = sadd.s32 1, %s2279_s26   ;;  %s2784_s24 = smov %s2275_s25 }
 0x300   : > { %p15_p1 = scmp.ge.s32.totalorder %s18_s26, 4   ;;  %s2785_s25 = smov %s2787_s28 }
 0x302   :  { %17 = sbr.rel (!%p15_p1) target bundleno = 2 (0x2), region = 90 }
 0x307   :  { %1608 = vsyncpa [#allocation4], 1 }
 0x308   :  { %1610 = vsyncpa [#allocation4 + $0x1], 1 }

</bundles_post_ra>
